<compile_context>
chip_gen: v7x
topology: tpu7x:2x2x1
jax: 0.10.0
libtpu: 0.0.40
codegen_flags: <defaults>
</compile_context>

<pallas_src>
import functools

import numpy as np
import jax
import jax.numpy as jnp
from jax import lax
from jax.experimental import pallas as pl
from jax.experimental.pallas import tpu as pltpu


def chebyshev_supports_kernel(e_ref, s_ref, *, cheb_k):
    """T_1..T_{K-1} of A = softmax(relu(E E^T), axis=1). s_ref: (K-1, N, N)."""
    e = e_ref[...].astype(jnp.float32)                            # (N, D)
    n = e.shape[0]

    # logits = relu(E @ E^T) without materializing a transpose copy.
    logits = lax.dot_general(e, e, (((1,), (1,)), ((), ())),
                             preferred_element_type=jnp.float32)  # (N, N)
    logits = jnp.maximum(logits, 0.0)
    m = jnp.max(logits, axis=1, keepdims=True)
    p = jnp.exp(logits - m)
    # Exact reciprocal: runs once per call (off the batch hot path).
    a = p * pl.reciprocal(jnp.sum(p, axis=1, keepdims=True), approx=False)

    s_ref[0] = a.astype(s_ref.dtype)                              # T_1 = A
    if cheb_k >= 3:
        row = lax.broadcasted_iota(jnp.int32, (n, n), 0)
        col = lax.broadcasted_iota(jnp.int32, (n, n), 1)
        prev2 = (row == col).astype(jnp.float32)                  # T_0 (recurrence only)
        prev1 = a
        for k in range(2, cheb_k):
            # Recurrence kept in f32; only the stored copy is cast.
            cur = (2.0 * jnp.dot(a, prev1, preferred_element_type=jnp.float32)
                   - prev2)
            s_ref[k - 1] = cur.astype(s_ref.dtype)
            prev2, prev1 = prev1, cur


def avwgcn_gconv_kernel(s_ref, e_ref, w_ref, bias_ref, x_ref, o_ref, *,
                        cheb_k, tb, c_in, c_out, embed_dim):
    """One batch tile (TB elements, folded into lanes) per grid step.

    s_ref   : (K-1, N, N)        Chebyshev supports T_1..T_{K-1}   (resident)
    e_ref   : (N, D)             node embeddings, f32              (resident)
    w_ref   : (K*C_in, D*C_out)  Wpool re-laid-out, rows (k,i) cols (d,o) (resident)
    bias_ref: (N, C_out)         E @ Bpool, f32                    (resident)
    x_ref   : (1, N, TB*C_in)    batch tile, lanes ordered (b, i)  (pipelined)
    o_ref   : (1, N, TB*C_out)   lanes ordered (b, o)
    """
    cdtype = x_ref.dtype
    x_blk = x_ref[0]                                              # (N, TB*C_in)

    # Stage A: supports applied to the whole batch tile at once.  RHS width
    # TB*C_in keeps MXU lanes busy even for small C_in; T_0 = I never hits the
    # MXU.  Outputs cast back to the compute dtype (no mixed-dtype concat).
    u_list = [x_blk]
    for k in range(1, cheb_k):
        u_k = jnp.dot(s_ref[k - 1], x_blk, preferred_element_type=jnp.float32)
        u_list.append(u_k.astype(cdtype))

    e = e_ref[...].astype(jnp.float32)                            # (N, D)
    bias = bias_ref[...].astype(jnp.float32)                      # (N, C_out)
    w_all = w_ref[...]                                            # (K*C_in, D*C_out)

    # Per-d scale columns hoisted out of the batch loop (no repeated broadcast).
    e_cols = [e[:, d:d + 1] for d in range(embed_dim)]

    outs = []
    for b in range(tb):
        # Gather this batch element's lanes from every u_k: (N, K*C_in).
        u_b = jnp.concatenate(
            [u[:, b * c_in:(b + 1) * c_in] for u in u_list], axis=1)
        # Lane-dense MXU matmul replaces the old (N, D*K*C_in) v-build:
        # y_b[:, d*C_out:(d+1)*C_out] = sum_{k,i} u_b[:, (k,i)] * Wpool[d,k,i,:]
        y_b = jnp.dot(u_b, w_all, preferred_element_type=jnp.float32)
        acc = bias
        for d in range(embed_dim):
            acc = acc + e_cols[d] * y_b[:, d * c_out:(d + 1) * c_out]
        outs.append(acc.astype(o_ref.dtype))

    # Lane-packed store: one (N, TB*C_out) write per grid step.
    o_ref[0] = jnp.concatenate(outs, axis=1)


def avwgcn_forward(x, node_embed, weights_pool, bias_pool, cheb_k, *,
                   batch_tile=8):
    B, N, C_in = x.shape
    D, K, _, C_out = weights_pool.shape
    assert K == cheb_k and cheb_k >= 2
    cdtype = x.dtype

    # The supports prep kernel is un-gridded: it holds the (N,N) logits/exp and
    # the (K-1,N,N) output in VMEM at once.  Guard it explicitly.
    assert (cheb_k + 2) * N * N * 4 <= 28 * 1024 * 1024, (
        f"node count N={N} too large for the single-shot supports kernel")

    # --- 1) Batch-independent supports, computed once (f32, stored as cdtype).
    supports = pl.pallas_call(
        functools.partial(chebyshev_supports_kernel, cheb_k=cheb_k),
        out_shape=jax.ShapeDtypeStruct((cheb_k - 1, N, N), cdtype),
        in_specs=[pl.BlockSpec(memory_space=pltpu.MemorySpace.VMEM)],
        out_specs=pl.BlockSpec(memory_space=pltpu.MemorySpace.VMEM),
        compiler_params=pltpu.CompilerParams(vmem_limit_bytes=32 * 1024 * 1024),
    )(node_embed)

    # --- 2) Batch-independent weight slab / bias (plain JAX, once per call).
    # w_all[(k*C_in + i), (d*C_out + o)] = Wpool[d, k, i, o]
    w_all = jnp.transpose(weights_pool, (1, 2, 0, 3)).reshape(
        K * C_in, D * C_out).astype(cdtype)
    bias_n = (node_embed @ bias_pool).astype(jnp.float32)          # (N, C_out)
    e_f32 = node_embed.astype(jnp.float32)                         # (N, D)

    # --- 3) Batch tiling: TB elements per grid step, folded into lanes.
    tb = max(1, min(batch_tile, B))
    G = pl.cdiv(B, tb)
    B_pad = G * tb
    if B_pad != B:
        x = jnp.concatenate(
            [x, jnp.zeros((B_pad - B, N, C_in), dtype=cdtype)], axis=0)
    # (B_pad, N, C_in) -> (G, N, TB*C_in) with lane index = b_in_tile*C_in + i.
    x_lanes = (x.reshape(G, tb, N, C_in)
                .transpose(0, 2, 1, 3)
                .reshape(G, N, tb * C_in))

    kernel = functools.partial(avwgcn_gconv_kernel, cheb_k=cheb_k, tb=tb,
                               c_in=C_in, c_out=C_out, embed_dim=D)
    # Resident operands: whole array in VMEM, single copy (no double buffer).
    resident = pl.BlockSpec(memory_space=pltpu.MemorySpace.VMEM)

    out_lanes = pl.pallas_call(
        kernel,
        out_shape=jax.ShapeDtypeStruct((G, N, tb * C_out), cdtype),
        grid=(G,),
        in_specs=[
            resident,                                             # supports
            resident,                                             # node_embed
            resident,                                             # W_all
            resident,                                             # bias
            pl.BlockSpec((1, N, tb * C_in), lambda g: (g, 0, 0)),  # x (pipelined)
        ],
        out_specs=pl.BlockSpec((1, N, tb * C_out), lambda g: (g, 0, 0)),
        compiler_params=pltpu.CompilerParams(
            dimension_semantics=("parallel",),
            # 32 MiB is safe on v5e/v6e/v7x and ample here; raise for very
            # large N / TB on v5e/v6e (keep <= ~48-56 MiB on v7x).
            vmem_limit_bytes=32 * 1024 * 1024,
        ),
    )(supports, e_f32, w_all, bias_n, x_lanes)

    # (G, N, TB*C_out) -> (B, N, C_out)
    out = (out_lanes.reshape(G, N, tb, C_out)
                    .transpose(0, 2, 1, 3)
                    .reshape(B_pad, N, C_out))
    return out[:B]


def avwgcn_ref(x, node_embed, weights_pool, bias_pool, cheb_k):
    """Pure-JAX reference mirroring the PyTorch forward exactly."""
    N = node_embed.shape[0]
    supports = jax.nn.softmax(jax.nn.relu(node_embed @ node_embed.T), axis=1)
    support_set = [jnp.eye(N, dtype=x.dtype), supports]
    for _ in range(2, cheb_k):
        support_set.append(2 * supports @ support_set[-1] - support_set[-2])
    supports = jnp.stack(support_set, axis=0)
    weights = jnp.einsum('nd,dkio->nkio', node_embed, weights_pool)
    bias = node_embed @ bias_pool
    x_g = jnp.einsum('knm,bmc->bknc', supports, x)
    x_g = jnp.transpose(x_g, (0, 2, 1, 3))
    return jnp.einsum('bnki,nkio->bno', x_g, weights) + bias


if __name__ == "__main__":
    # Small shapes consistent with the module's forward; B=5 with batch_tile=2
    # exercises the multi-step grid, the per-tile batch loop and the padding path.
    B, N, C_IN, C_OUT, CHEB_K, EMBED_DIM = 5, 16, 4, 8, 3, 8

    key = jax.random.PRNGKey(0)
    k_x, k_e, k_w, k_b = jax.random.split(key, 4)

    x = jax.random.normal(k_x, (B, N, C_IN), dtype=jnp.float32)
    node_embed = jax.random.normal(k_e, (N, EMBED_DIM), dtype=jnp.float32)
    # Deterministic synthetic parameters (module's __init__ only defines shapes).
    weights_pool = 0.1 * jax.random.normal(
        k_w, (EMBED_DIM, CHEB_K, C_IN, C_OUT), dtype=jnp.float32)
    bias_pool = 0.1 * jax.random.normal(
        k_b, (EMBED_DIM, C_OUT), dtype=jnp.float32)

    out = avwgcn_forward(x, node_embed, weights_pool, bias_pool, CHEB_K,
                         batch_tile=2)
    out = jax.block_until_ready(out)

    ref = avwgcn_ref(x, node_embed, weights_pool, bias_pool, CHEB_K)
    np.testing.assert_allclose(np.asarray(out), np.asarray(ref),
                               rtol=1e-4, atol=1e-4)
    print("KERNEL_OK")
</pallas_src>

<mosaic_0001>
module attributes {stable_mosaic.version = 11 : i64} {
  func.func @chebyshev_supports_kernel(%arg0: memref<16x8xf32, #tpu.memory_space<vmem>>, %arg1: memref<2x16x16xf32, #tpu.memory_space<vmem>>) attributes {dimension_semantics = [], scalar_prefetch = 0 : i64, scratch_operands = 0 : i64, tpu.core_type = #tpu.core_type<tc>} {
    %c0 = arith.constant 0 : index
    %c0_0 = arith.constant 0 : index
    %0 = vector.load %arg0[%c0, %c0_0] : memref<16x8xf32, #tpu.memory_space<vmem>>, vector<16x8xf32>
    %cst = arith.constant dense<0.000000e+00> : vector<16x16xf32>
    %1 = tpu.matmul %0, %0, %cst {dimension_numbers = #tpu.dot_dimension_numbers<[1], [1], [0], [0], [0, 0, 1, 0], [], []>} : vector<16x8xf32>, vector<16x8xf32>, vector<16x16xf32> -> vector<16x16xf32>
    %cst_1 = arith.constant 0.000000e+00 : f32
    %2 = vector.broadcast %cst_1 : f32 to vector<16x16xf32>
    %3 = arith.maximumf %1, %2 : vector<16x16xf32>
    %cst_2 = arith.constant dense<0xFF800000> : vector<16xf32>
    %4 = vector.multi_reduction <maximumf>, %3, %cst_2 [1] : vector<16x16xf32> to vector<16xf32>
    %5 = vector.shape_cast %4 : vector<16xf32> to vector<16x1xf32>
    %6 = vector.broadcast %5 : vector<16x1xf32> to vector<16x16xf32>
    %7 = arith.subf %3, %6 : vector<16x16xf32>
    %8 = math.exp %7 : vector<16x16xf32>
    %cst_3 = arith.constant dense<0.000000e+00> : vector<16xf32>
    %9 = vector.multi_reduction <add>, %8, %cst_3 [1] : vector<16x16xf32> to vector<16xf32>
    %10 = vector.shape_cast %9 : vector<16xf32> to vector<16x1xf32>
    %11 = tpu.reciprocal %10 : vector<16x1xf32> -> vector<16x1xf32>
    %12 = vector.broadcast %11 : vector<16x1xf32> to vector<16x16xf32>
    %13 = arith.mulf %8, %12 : vector<16x16xf32>
    %c0_4 = arith.constant 0 : index
    %c0_5 = arith.constant 0 : index
    %c0_6 = arith.constant 0 : index
    %14 = vector.load %arg1[%c0_4, %c0_5, %c0_6] : memref<2x16x16xf32, #tpu.memory_space<vmem>>, vector<1x16x16xf32>
    %15 = vector.shape_cast %14 : vector<1x16x16xf32> to vector<16x16xf32>
    %16 = vector.shape_cast %13 : vector<16x16xf32> to vector<1x16x16xf32>
    tpu.vector_store %arg1[%c0_4, %c0_5, %c0_6], %16 {strides = array<i32>} : memref<2x16x16xf32, #tpu.memory_space<vmem>>, vector<1x16x16xf32>,
    %17 = tpu.iota {dimensions = array<i32: 0>} : vector<16x16xi32>
    %18 = tpu.iota {dimensions = array<i32: 1>} : vector<16x16xi32>
    %19 = arith.cmpi eq, %17, %18 : vector<16x16xi32>
    %20 = arith.extui %19 : vector<16x16xi1> to vector<16x16xi32>
    %21 = arith.sitofp %20 : vector<16x16xi32> to vector<16x16xf32>
    %cst_7 = arith.constant dense<0.000000e+00> : vector<16x16xf32>
    %22 = tpu.matmul %13, %13, %cst_7 {dimension_numbers = #tpu.dot_dimension_numbers<[1], [0], [0], [1], [0, 0, 1, 1], [], []>} : vector<16x16xf32>, vector<16x16xf32>, vector<16x16xf32> -> vector<16x16xf32>
    %cst_8 = arith.constant 2.000000e+00 : f32
    %23 = vector.broadcast %cst_8 : f32 to vector<16x16xf32>
    %24 = arith.mulf %23, %22 : vector<16x16xf32>
    %25 = arith.subf %24, %21 : vector<16x16xf32>
    %c1 = arith.constant 1 : index
    %c0_9 = arith.constant 0 : index
    %c0_10 = arith.constant 0 : index
    %26 = vector.load %arg1[%c1, %c0_9, %c0_10] : memref<2x16x16xf32, #tpu.memory_space<vmem>>, vector<1x16x16xf32>
    %27 = vector.shape_cast %26 : vector<1x16x16xf32> to vector<16x16xf32>
    %28 = vector.shape_cast %25 : vector<16x16xf32> to vector<1x16x16xf32>
    tpu.vector_store %arg1[%c1, %c0_9, %c0_10], %28 {strides = array<i32>} : memref<2x16x16xf32, #tpu.memory_space<vmem>>, vector<1x16x16xf32>,
    return
  }
}

</mosaic_0001>

<bundles_post_ra>
// kernel: tpu_custom_call.1
= control target key start
LH: loop header
LB: loop body
LE: loop exit
PB: predicated region body
PF: predicated region fallthrough
CT: control target
= control target key end

     0   :  { %vm11_vm0 = vcmask 64512   ;;  %s353_s0 = inlined_call_operand.vmem [shape: f32[16,8], index: 0, kind: input, shape index: {}]   ;;  %s354_s1 = inlined_call_operand.hbm [shape: f32[2,16,16], index: 1, kind: output, shape index: {}]  }
   0x1   :  { %v9_v0 = vld [vmem:[%s353_s0] sm:$0xff]  ;;  %v10_v1 = vld [vmem:[%s353_s0 + $0x8] sm:$0xff] }
   0x2   :  { %6 = vsyncpa [#allocation3], 0  ;;  %v265_v2 = vpack.c.bf16 %v10_v1, %v9_v0  ;;  %255 = vmatprep.mubr.msk.f32.mxu0 %vm11_vm0, %v9_v0  ;;  %vm95_vm2 = vcmask 130048   ;;  %v120_v26 = vlaneseq  ;;  %v311_v30 = vmov 0.0   ;;  %s312_s0 = smov [#allocation2]  }
   0x3   :  { %vm266_vm1 = vmpackc.low %vm11_vm0, %vm11_vm0  ;;  %s224_s10 = sshll.u32 %s312_s0, 4  ;;  %s225_s10 = int_to_ptr.vmem [resolvable:$true] %s224_s10 }
   0x4   :  { %267 = vmatprep.subr.msk.bf16.mxu0 %vm266_vm1, %v265_v2  ;;  %v121_v27 = vshrl.u32 %v120_v26, 7  ;;  %v124_v29 = vand.u32 127, %v120_v26  ;;  %s287_s11 = scalar_lea.vmem %s225_s10, 512  ;;  %p292_p1 = scmp.lt.s32.totalorder %s225_s10, %s225_s10 }
   0x5   :  { %270 = vmatpush3.bf16.xpose.msk.msra.mxu0 %vm266_vm1, %v265_v2  ;;  %p288_p0 = scmp.ne.s32.totalorder %s225_s10, %s287_s11  ;;  %p293_p2 = scmp.lt.s32.totalorder %s287_s11, %s287_s11 }
   0x6   :  { %v122_v28 = vadd.s32 8, %v121_v27  ;;  %vm125_vm4 = vcmp.eq.s32.totalorder %v121_v27, %v124_v29 }
   0x7   :  { %v239_v34 = vsel %vm125_vm4, 1.0, %v311_v30  ;;  %p294_p3 = por %p293_p2, %p292_p1 }
   0x8   :  { %vm126_vm3 = vcmp.eq.s32.totalorder %v122_v28, %v124_v29 }
   0x9   :  { %v240_v31 = vsel %vm126_vm3, 1.0, %v311_v30  ;;  %p295_p4 = pnand %p294_p3, %p288_p0 }
   0xc   :  { %256 = vmatmul.mubr.msk.f32.vlgmr.msra.gmra.mrb[0].mxu0 %vm11_vm0, %v10_v1 }
  0xdf   :  { %v257_v3 = vpop.f32.mrb[0].mxu0 }
  0xe0   :  { %v84_v4 = vpop.f32.mrb[1].mxu0  ;;  %v94_v6 = vmax.f32 %v257_v3, 0.0 }
  0xe1   :  { %v93_v5 = vmax.f32 %v84_v4, 0.0 }
  0xe2   :  { %v99_v8 = vsel %vm95_vm2, %v94_v6, -inf }
  0xe3   :  { %v96_v7 = vsel %vm95_vm2, %v93_v5, -inf }
  0xe4   :  { %97 = vmax.xlane.f32.xlu0 %v96_v7 }
  0xe8   :  { %100 = vmax.xlane.f32.xlu0 %v99_v8 }
 0x171   :  { %v98_v9 = vpop.xlane.xlu0 %97 }
 0x172   :  { %v102_v10 = vsub.f32 %v93_v5, %v98_v9 }
 0x174   :  { %v104_v11 = vmul.f32 1.442695, %v102_v10 }
 0x175   :  { %v101_v12 = vpop.xlane.xlu0 %100 }
 0x176   :  { %279 = vpow2.f32 %v104_v11  ;;  %v103_v13 = vsub.f32 %v94_v6, %v101_v12 }
 0x178   :  { %v106_v14 = vmul.f32 1.442695, %v103_v13 }
 0x17a   :  { %281 = vpow2.f32 %v106_v14 }
 0x180   :  { %v280_v15 = vpop.eup %279 }
 0x181   :  { %v108_v16 = vsel %vm95_vm2, %v280_v15, 0.0 }
 0x182   :  { %109 = vadd.xlane.f32.xlu1 %v108_v16 }
 0x184   :  { %v282_v17 = vpop.eup %281 }
 0x185   :  { %v111_v18 = vsel %vm95_vm2, %v282_v17, 0.0 }
 0x186   :  { %112 = vadd.xlane.f32.xlu1 %v111_v18 }
 0x20f   :  { %v110_v19 = vpop.xlane.xlu1 %109 }
 0x210   :  { %283 = vrcp.f32 %v110_v19 }
 0x213   :  { %v113_v20 = vpop.xlane.xlu1 %112 }
 0x214   :  { %285 = vrcp.f32 %v113_v20 }
 0x21a   :  { %v284_v21 = vpop.eup %283 }
 0x21b   :  { %v116_v22 = vmul.f32 %v284_v21, %v280_v15 }
 0x21d   :  { %118 = vst.msk [vmem:[#allocation2] sm:$0xff] %vm95_vm2, %v116_v22  ;;  %262 = vmatprep.mubr.msk.f32.mxu1 %vm95_vm2, %v116_v22 }
 0x21e   :  { %v286_v23 = vpop.eup %285 }
 0x21f   :  { %v117_v24 = vmul.f32 %v286_v23, %v282_v17 }
 0x221   :  { %119 = vst.msk [vmem:[#allocation2 + $0x8] sm:$0xff] %vm95_vm2, %v117_v24  ;;  %v271_v25 = vpack.c.bf16 %v117_v24, %v116_v22 }
 0x223   :  { %272 = vmatprep.subr.bf16.mxu1 %v271_v25 }
 0x224   :  { %274 = vmatpush3.bf16.msra.mxu1 %v271_v25 }
 0x227   :  { %263 = vmatmul.mubr.msk.f32.vlgmr.msra.gmra.mrb[0].mxu1 %vm95_vm2, %v117_v24 }
 0x2fa   :  { %v264_v32 = vpop.f32.mrb[0].mxu1 }
 0x2fb   :  { %v213_v33 = vmul.f32 2.0, %v264_v32  ;;  %v203_v35 = vpop.f32.mrb[1].mxu1 }
 0x2fc   :  { %v212_v36 = vmul.f32 2.0, %v203_v35 }
 0x2fd   :  { %v215_v37 = vsub.f32 %v213_v33, %v240_v31 }
 0x2fe   :  { %v214_v38 = vsub.f32 %v212_v36, %v239_v34 }
 0x2ff   :  { %218 = vst.msk [vmem:[#allocation2 + $0x18] sm:$0xff] %vm95_vm2, %v215_v37 }
 0x300   :  { %217 = vst.msk [vmem:[#allocation2 + $0x10] sm:$0xff] %vm95_vm2, %v214_v38 }
 0x301   :  { %298 = shalt.err (!%p295_p4)
}
 0x302   :  { %s299_s14 = scalar_lea.hbm %s354_s1, 512 }
 0x303   :  { %p300_p5 = scmp.ne.s32.totalorder %s354_s1, %s299_s14  ;;  %p303_p6 = scmp.lt.u32.totalorder %s299_s14, %s354_s1 }
 0x305   :  { %p305_p7 = pnand %p303_p6, %p300_p5 }
 0x307   :  { %308 = shalt.err (!%p305_p7)
}
 0x308   :  { %s313_s19 = smov 128   ;;  %s314_s20 = smov 8  }
 0x309   :  { %230 = dma.vmem_to_hbm [thread:$0]  %s225_s10, 512, %s354_s1, [#allocation3], %s313_s19, %s313_s19, %s314_s20  }
 0x30a   :  { %309 = dma.done.wait [#allocation3], 512  }
 0x30b   :  { %310 = vsyncadd [#allocation3], 4294966784 }
 0x30c   :  { %234 = vsyncpa [#allocation3], 1 }

</bundles_post_ra>
